<compile_context>
chip_gen: v7x
topology: tpu7x:2x2x1
jax: 0.10.0
libtpu: 0.0.40
codegen_flags: <defaults>
</compile_context>

<pallas_src>
import functools

import jax
import jax.numpy as jnp
from jax.experimental import pallas as pl
from jax.experimental.pallas import tpu as pltpu

_NEG_INF = -1e9  # matches torch masked_fill(mask == 0, -1000000000.0)


# ------------------------------- kernels --------------------------------------
def _make_sdpa_kernel(scale, has_mask):
    """Builds a fused SDPA kernel. `scale` = 1/temperature (static python float)."""

    def _core(q, k, v, mask):
        # q: (TQ, D)  k/v: (Lk, D) / (Lk, Dv)  mask: (TQ, Lk) int32 or None
        qs = q.astype(jnp.float32) * scale
        # scores: (TQ, Lk) = q @ k^T   (contract over D), f32 accumulation on MXU
        s = jax.lax.dot_general(qs, k.astype(jnp.float32),
                                (((1,), (1,)), ((), ())),
                                preferred_element_type=jnp.float32)
        if mask is not None:
            s = jnp.where(mask == 0, _NEG_INF, s)
        # numerically-stable softmax along the key (lane) axis
        m = jnp.max(s, axis=-1, keepdims=True)
        p = jnp.exp(s - m)
        l = jnp.sum(p, axis=-1, keepdims=True)
        attn = p / l
        # eval-mode dropout == identity
        out = jnp.dot(attn, v.astype(jnp.float32),
                      preferred_element_type=jnp.float32)
        return out, attn

    if has_mask:
        def kernel(q_ref, k_ref, v_ref, mask_ref, out_ref, attn_ref):
            out, attn = _core(q_ref[...], k_ref[...], v_ref[...], mask_ref[...])
            out_ref[...] = out.astype(out_ref.dtype)
            attn_ref[...] = attn.astype(attn_ref.dtype)
    else:
        def kernel(q_ref, k_ref, v_ref, out_ref, attn_ref):
            out, attn = _core(q_ref[...], k_ref[...], v_ref[...], None)
            out_ref[...] = out.astype(out_ref.dtype)
            attn_ref[...] = attn.astype(attn_ref.dtype)

    return kernel


# ------------------------------- wrapper ---------------------------------------
def _pick_q_tile(lq):
    # Largest easy tile: 128-row tiles when divisible (8-sublane aligned),
    # otherwise fall back to the full extent (required for small / odd Lq).
    if lq % 128 == 0:
        return 128
    if lq % 8 == 0 and lq > 128:
        # any multiple of 8 that divides lq, capped at 512 rows
        for t in (512, 256, 128, 64, 32, 16, 8):
            if lq % t == 0:
                return t
    return lq


def scaled_dot_product_attention(q, k, v, mask=None, *, temperature):
    """q,k,v: (B, H, L, D) float32; mask broadcastable to (B, H, Lq, Lk) (0 = masked).

    Returns (output, attn) exactly like the PyTorch module (dropout in eval mode).
    """
    B, H, Lq, D = q.shape
    Lk = k.shape[2]
    Dv = v.shape[3]
    BH = B * H

    q2 = q.reshape(BH, Lq, D)
    k2 = k.reshape(BH, Lk, D)
    v2 = v.reshape(BH, Lk, Dv)

    TQ = _pick_q_tile(Lq)
    grid = (BH, Lq // TQ)

    in_specs = [
        pl.BlockSpec((None, TQ, D), lambda bh, qi: (bh, qi, 0)),   # q tile
        pl.BlockSpec((None, Lk, D), lambda bh, qi: (bh, 0, 0)),    # k (resident per bh)
        pl.BlockSpec((None, Lk, Dv), lambda bh, qi: (bh, 0, 0)),   # v (resident per bh)
    ]
    args = [q2, k2, v2]
    if mask is not None:
        m2 = jnp.broadcast_to(mask, (B, H, Lq, Lk)).reshape(BH, Lq, Lk).astype(jnp.int32)
        in_specs.append(pl.BlockSpec((None, TQ, Lk), lambda bh, qi: (bh, qi, 0)))
        args.append(m2)

    out_specs = (
        pl.BlockSpec((None, TQ, Dv), lambda bh, qi: (bh, qi, 0)),  # output tile
        pl.BlockSpec((None, TQ, Lk), lambda bh, qi: (bh, qi, 0)),  # attn tile
    )
    out_shape = (
        jax.ShapeDtypeStruct((BH, Lq, Dv), q.dtype),
        jax.ShapeDtypeStruct((BH, Lq, Lk), jnp.float32),
    )

    kernel = _make_sdpa_kernel(1.0 / float(temperature), mask is not None)

    out2, attn2 = pl.pallas_call(
        kernel,
        grid=grid,
        in_specs=in_specs,
        out_specs=out_specs,
        out_shape=out_shape,
        compiler_params=pltpu.CompilerParams(
            dimension_semantics=("parallel", "parallel")),
    )(*args)

    return out2.reshape(B, H, Lq, Dv), attn2.reshape(B, H, Lq, Lk)


# ----------------------------- pure-JAX reference -----------------------------
def sdpa_ref(q, k, v, mask, temperature):
    attn = jnp.matmul(q / temperature, jnp.swapaxes(k, -2, -1))
    if mask is not None:
        attn = jnp.where(mask == 0, _NEG_INF, attn)
    attn = jax.nn.softmax(attn, axis=-1)
    out = jnp.matmul(attn, v)
    return out, attn


# ----------------------------------- main -------------------------------------
if __name__ == "__main__":
    B, H, L, D = 2, 4, 16, 16
    temperature = float(D) ** 0.5

    key = jax.random.PRNGKey(0)
    kq, kk, kv = jax.random.split(key, 3)
    q = jax.random.normal(kq, (B, H, L, D), jnp.float32)
    k = jax.random.normal(kk, (B, H, L, D), jnp.float32)
    v = jax.random.normal(kv, (B, H, L, D), jnp.float32)

    # causal mask, broadcast over batch/heads: 0 = masked out
    mask = jnp.tril(jnp.ones((L, L), jnp.int32))[None, None, :, :]  # (1, 1, L, L)

    # masked path
    out, attn = scaled_dot_product_attention(q, k, v, mask, temperature=temperature)
    out = jax.block_until_ready(out)
    attn = jax.block_until_ready(attn)
    out_ref, attn_ref = sdpa_ref(q, k, v, mask, temperature)
    assert out.shape == out_ref.shape and attn.shape == attn_ref.shape
    assert jnp.allclose(out, out_ref, atol=1e-4, rtol=1e-4), \
        float(jnp.max(jnp.abs(out - out_ref)))
    assert jnp.allclose(attn, attn_ref, atol=1e-4, rtol=1e-4), \
        float(jnp.max(jnp.abs(attn - attn_ref)))

    # unmasked path
    out2, attn2 = scaled_dot_product_attention(q, k, v, None, temperature=temperature)
    out2 = jax.block_until_ready(out2)
    out2_ref, attn2_ref = sdpa_ref(q, k, v, None, temperature)
    assert jnp.allclose(out2, out2_ref, atol=1e-4, rtol=1e-4)
    assert jnp.allclose(attn2, attn2_ref, atol=1e-4, rtol=1e-4)

    print("KERNEL_OK")
</pallas_src>

<mosaic_0001>
module attributes {stable_mosaic.version = 11 : i64} {
  func.func @kernel(%arg0: i32, %arg1: i32, %arg2: memref<1x16x16xf32, #tpu.memory_space<vmem>>, %arg3: memref<1x16x16xf32, #tpu.memory_space<vmem>>, %arg4: memref<1x16x16xf32, #tpu.memory_space<vmem>>, %arg5: memref<1x16x16xi32, #tpu.memory_space<vmem>>, %arg6: memref<1x16x16xf32, #tpu.memory_space<vmem>>, %arg7: memref<1x16x16xf32, #tpu.memory_space<vmem>>) attributes {dimension_semantics = [#tpu.dimension_semantics<parallel>, #tpu.dimension_semantics<parallel>], iteration_bounds = array<i64: 8, 1>, scalar_prefetch = 0 : i64, scratch_operands = 0 : i64, tpu.core_type = #tpu.core_type<tc>, window_params = [{transform_indices = @transform_0, window_bounds = array<i64: 1, 16, 16>}, {transform_indices = @transform_1, window_bounds = array<i64: 1, 16, 16>}, {transform_indices = @transform_2, window_bounds = array<i64: 1, 16, 16>}, {transform_indices = @transform_3, window_bounds = array<i64: 1, 16, 16>}, {transform_indices = @transform_4, window_bounds = array<i64: 1, 16, 16>}, {transform_indices = @transform_5, window_bounds = array<i64: 1, 16, 16>}]} {
    %c0 = arith.constant 0 : index
    %c0_0 = arith.constant 0 : index
    %c0_1 = arith.constant 0 : index
    %0 = vector.load %arg2[%c0, %c0_0, %c0_1] : memref<1x16x16xf32, #tpu.memory_space<vmem>>, vector<1x16x16xf32>
    %1 = vector.shape_cast %0 : vector<1x16x16xf32> to vector<16x16xf32>
    %c0_2 = arith.constant 0 : index
    %c0_3 = arith.constant 0 : index
    %c0_4 = arith.constant 0 : index
    %2 = vector.load %arg3[%c0_2, %c0_3, %c0_4] : memref<1x16x16xf32, #tpu.memory_space<vmem>>, vector<1x16x16xf32>
    %3 = vector.shape_cast %2 : vector<1x16x16xf32> to vector<16x16xf32>
    %c0_5 = arith.constant 0 : index
    %c0_6 = arith.constant 0 : index
    %c0_7 = arith.constant 0 : index
    %4 = vector.load %arg4[%c0_5, %c0_6, %c0_7] : memref<1x16x16xf32, #tpu.memory_space<vmem>>, vector<1x16x16xf32>
    %5 = vector.shape_cast %4 : vector<1x16x16xf32> to vector<16x16xf32>
    %c0_8 = arith.constant 0 : index
    %c0_9 = arith.constant 0 : index
    %c0_10 = arith.constant 0 : index
    %6 = vector.load %arg5[%c0_8, %c0_9, %c0_10] : memref<1x16x16xi32, #tpu.memory_space<vmem>>, vector<1x16x16xi32>
    %7 = vector.shape_cast %6 : vector<1x16x16xi32> to vector<16x16xi32>
    %cst = arith.constant 2.500000e-01 : f32
    %8 = vector.broadcast %cst : f32 to vector<16x16xf32>
    %9 = arith.mulf %1, %8 : vector<16x16xf32>
    %cst_11 = arith.constant dense<0.000000e+00> : vector<16x16xf32>
    %10 = tpu.matmul %9, %3, %cst_11 {dimension_numbers = #tpu.dot_dimension_numbers<[1], [1], [0], [0], [0, 0, 1, 0], [], []>} : vector<16x16xf32>, vector<16x16xf32>, vector<16x16xf32> -> vector<16x16xf32>
    %c0_i32 = arith.constant 0 : i32
    %11 = vector.broadcast %c0_i32 : i32 to vector<16x16xi32>
    %12 = arith.cmpi eq, %7, %11 : vector<16x16xi32>
    %cst_12 = arith.constant -1.000000e+09 : f32
    %13 = vector.broadcast %cst_12 : f32 to vector<16x16xf32>
    %14 = arith.select %12, %13, %10 : vector<16x16xi1>, vector<16x16xf32>
    %cst_13 = arith.constant dense<0xFF800000> : vector<16xf32>
    %15 = vector.multi_reduction <maximumf>, %14, %cst_13 [1] : vector<16x16xf32> to vector<16xf32>
    %16 = vector.shape_cast %15 : vector<16xf32> to vector<16x1xf32>
    %17 = vector.broadcast %16 : vector<16x1xf32> to vector<16x16xf32>
    %18 = arith.subf %14, %17 : vector<16x16xf32>
    %19 = math.exp %18 : vector<16x16xf32>
    %cst_14 = arith.constant dense<0.000000e+00> : vector<16xf32>
    %20 = vector.multi_reduction <add>, %19, %cst_14 [1] : vector<16x16xf32> to vector<16xf32>
    %21 = vector.shape_cast %20 : vector<16xf32> to vector<16x1xf32>
    %22 = vector.broadcast %21 : vector<16x1xf32> to vector<16x16xf32>
    %23 = arith.divf %19, %22 : vector<16x16xf32>
    %cst_15 = arith.constant dense<0.000000e+00> : vector<16x16xf32>
    %24 = tpu.matmul %23, %5, %cst_15 {dimension_numbers = #tpu.dot_dimension_numbers<[1], [0], [0], [1], [0, 0, 1, 1], [], []>} : vector<16x16xf32>, vector<16x16xf32>, vector<16x16xf32> -> vector<16x16xf32>
    %c0_16 = arith.constant 0 : index
    %c0_17 = arith.constant 0 : index
    %c0_18 = arith.constant 0 : index
    %25 = vector.load %arg6[%c0_16, %c0_17, %c0_18] : memref<1x16x16xf32, #tpu.memory_space<vmem>>, vector<1x16x16xf32>
    %26 = vector.shape_cast %25 : vector<1x16x16xf32> to vector<16x16xf32>
    %27 = vector.shape_cast %24 : vector<16x16xf32> to vector<1x16x16xf32>
    tpu.vector_store %arg6[%c0_16, %c0_17, %c0_18], %27 {strides = array<i32>} : memref<1x16x16xf32, #tpu.memory_space<vmem>>, vector<1x16x16xf32>,
    %c0_19 = arith.constant 0 : index
    %c0_20 = arith.constant 0 : index
    %c0_21 = arith.constant 0 : index
    %28 = vector.load %arg7[%c0_19, %c0_20, %c0_21] : memref<1x16x16xf32, #tpu.memory_space<vmem>>, vector<1x16x16xf32>
    %29 = vector.shape_cast %28 : vector<1x16x16xf32> to vector<16x16xf32>
    %30 = vector.shape_cast %23 : vector<16x16xf32> to vector<1x16x16xf32>
    tpu.vector_store %arg7[%c0_19, %c0_20, %c0_21], %30 {strides = array<i32>} : memref<1x16x16xf32, #tpu.memory_space<vmem>>, vector<1x16x16xf32>,
    return
  }
  func.func @transform_0(%arg0: i32, %arg1: i32) -> (i32, i32, i32) {
    %c0_i32 = arith.constant 0 : i32
    %c0_i32_0 = arith.constant 0 : i32
    return %arg0, %arg1, %c0_i32 : i32, i32, i32
  }
  func.func @transform_1(%arg0: i32, %arg1: i32) -> (i32, i32, i32) {
    %c0_i32 = arith.constant 0 : i32
    %c0_i32_0 = arith.constant 0 : i32
    %c0_i32_1 = arith.constant 0 : i32
    return %arg0, %c0_i32, %c0_i32_0 : i32, i32, i32
  }
  func.func @transform_2(%arg0: i32, %arg1: i32) -> (i32, i32, i32) {
    %c0_i32 = arith.constant 0 : i32
    %c0_i32_0 = arith.constant 0 : i32
    %c0_i32_1 = arith.constant 0 : i32
    return %arg0, %c0_i32, %c0_i32_0 : i32, i32, i32
  }
  func.func @transform_3(%arg0: i32, %arg1: i32) -> (i32, i32, i32) {
    %c0_i32 = arith.constant 0 : i32
    %c0_i32_0 = arith.constant 0 : i32
    return %arg0, %arg1, %c0_i32 : i32, i32, i32
  }
  func.func @transform_4(%arg0: i32, %arg1: i32) -> (i32, i32, i32) {
    %c0_i32 = arith.constant 0 : i32
    %c0_i32_0 = arith.constant 0 : i32
    return %arg0, %arg1, %c0_i32 : i32, i32, i32
  }
  func.func @transform_5(%arg0: i32, %arg1: i32) -> (i32, i32, i32) {
    %c0_i32 = arith.constant 0 : i32
    %c0_i32_0 = arith.constant 0 : i32
    return %arg0, %arg1, %c0_i32 : i32, i32, i32
  }
}

</mosaic_0001>

<bundles_post_ra>
// kernel: tpu_custom_call.1
= control target key start
LH: loop header
LB: loop body
LE: loop exit
PB: predicated region body
PF: predicated region fallthrough
CT: control target
= control target key end

     0   :  { %s1674_s0 = inlined_call_operand.hbm [shape: f32[8,16,16], index: 0, kind: input, shape index: {}]   ;;  %s1675_s1 = inlined_call_operand.hbm [shape: f32[8,16,16], index: 1, kind: input, shape index: {}]   ;;  %s1676_s2 = inlined_call_operand.hbm [shape: f32[8,16,16], index: 2, kind: input, shape index: {}]   ;;  %s1677_s3 = inlined_call_operand.hbm [shape: s32[8,16,16], index: 3, kind: input, shape index: {}]   ;;  %s1678_s4 = inlined_call_operand.hbm [shape: f32[8,16,16], index: 4, kind: output, shape index: {0}]   ;;  %s1679_s5 = inlined_call_operand.hbm [shape: f32[8,16,16], index: 5, kind: output, shape index: {1}]  }
   0x1   :  { %1691 = sst [smem:[#allocation24_spill]] %s1674_s0 }
   0x2   :  { %1692 = sst [smem:[#allocation25_spill]] %s1675_s1 }
   0x3   :  { %11 = vsyncpa [#allocation3], 0 }
   0x4   :  { %13 = vsyncpa [#allocation3 + $0x1], 0 }
   0x5   :  { %14 = vsyncpa [#allocation6], 0 }
   0x6   :  { %16 = vsyncpa [#allocation6 + $0x1], 0 }
   0x7   :  { %17 = vsyncpa [#allocation9], 0 }
   0x8   :  { %19 = vsyncpa [#allocation9 + $0x1], 0 }
   0x9   :  { %20 = vsyncpa [#allocation4], 0 }
   0xa   :  { %22 = vsyncpa [#allocation4 + $0x1], 0 }
   0xb   :  { %23 = vsyncpa [#allocation12], 0 }
   0xc   :  { %25 = vsyncpa [#allocation12 + $0x1], 0  ;;  %s1291_s18 = smov 0   ;;  %s1293_s19 = smov 0  }
   0xd   :  { %s1295_s20 = smov 0   ;;  %s1297_s21 = smov 0  }
   0xe   :  { %s1299_s22 = smov 0   ;;  %s1301_s23 = smov 0  }
   0xf LB: > { %1693 = sst [smem:[#allocation18_spill]] %s1229_s18  ;;  %s1322_s24 = sadd.s32 4294967295, %s1249_s23   ;;  %s1249_s23 = sphi %s1301_s23, %s31_s23   ;;  %s1245_s22 = sphi %s1299_s22, %s1721_s22   ;;  %s1241_s21 = sphi %s1297_s21, %s1720_s21   ;;  %s1237_s20 = sphi %s1295_s20, %s1719_s20   ;;  %s1233_s19 = sphi %s1293_s19, %s1723_s19   ;;  %s1229_s18 = sphi %s1291_s18, %s1722_s18  }
  0x10   : > { %1694 = sst [smem:[#allocation19_spill]] %s1237_s20  ;;  %s839_s25 = sadd.s32 4294967294, %s1249_s23  }
  0x11   : > { %1695 = sst [smem:[#allocation20_spill]] %s1245_s22  ;;  %s43_s26 = sadd.s32 1, %s1245_s22 }
  0x12   : > { %s52_s27 = sadd.s32 1, %s1237_s20  ;;  %p45_p0 = scmp.ge.s32.totalorder %s43_s26, 8 }
  0x13   : > { %p59_p1 = scmp.ne.s32.totalorder %s1237_s20, %s1233_s19  ;;  %p60_p2 = scmp.eq.s32.totalorder %s1249_s23, 0 }
  0x14   : > { %p65_p3 = scmp.ne.s32.totalorder %s1233_s19, %s1229_s18  ;;  %s1725_s26 = smov (%p45_p0, %s43_s26), 0 }
  0x15   : > { %1696 = sst [smem:[#allocation21_spill]] %s1725_s26  ;;  %p1334_p4 = por %p60_p2, %p59_p1 }
  0x16   : > { %p66_p5 = scmp.eq.s32.totalorder %s1322_s24, 0  ;;  %s47_s29 = ssub.s32 %s1245_s22, %s1725_s26 }
  0x17   : > { %p171_p6 = scmp.eq.s32.totalorder %s1322_s24, 7  ;;  %p50_p7 = scmp.eq.s32.totalorder %s47_s29, 0 }
  0x18   : > { %p1342_p8 = por %p66_p5, %p65_p3  ;;  %p177_p10 = scmp.eq.s32.totalorder %s839_s25, 7 }
  0x19   : > { %p1346_p9 = por %p171_p6, %p59_p1  ;;  %p945_p12 = scmp.lt.s32.totalorder %s1249_s23, 8 }
  0x1a   : > { %s1698_s30 = scalar_select %p1342_p8, 1, 0 }
  0x1b   : > { %s1699_s6 = scalar_select %p1346_p9, 1, 0 }
  0x1c   : > { %s1351_s7 = scalar_select %p50_p7, %s1237_s20, %s52_s27  }
  0x1d   : > { %p1353_p11 = por %p177_p10, %p65_p3  ;;  %s1359_s9 = sand.u32 1, %s1237_s20  }
  0x1e   : > { %1700 = sst [smem:[#allocation22_spill]] %s1351_s7  ;;  %s1362_s10 = sshll.u32 %s1359_s9, 4 }
  0x1f   : > { %s1701_s8 = scalar_select %p1353_p11, 1, 0 }
  0x20   : > { %s1365_s11 = sshll.u32 %s1245_s22, 8  ;;  %p1369_p13 = pnand %p945_p12, %p1334_p4 }
  0x21   : > { %1702 = sst [smem:[#allocation23_spill]] %s1701_s8  ;;  %s248_s13 = sand.u32 1, %s1249_s23  }
  0x22   : > { %s1704_s1 = sld [smem:[#allocation25_spill]]  ;;  %s252_s17 = scalar_lea.vmem [#allocation5], %s1362_s10 }
  0x23   : > { %s259_s25 = sshll.u32 %s252_s17, 4  ;;  %s1385_s27 = scalar_lea.sflag [#allocation6], %s248_s13  ;;  %s1382_s25 = int_to_ptr.vmem [resolvable:$true] %s259_s25 }
  0x24   : > { %p1391_p3 = pneg %p1369_p13 }
  0x28   : > { %s1378_s16 = scalar_lea.hbm %s1704_s1, %s1365_s11  ;;  %s1012_s17 = scalar_lea.hbm %s1704_s1, 2048 }
  0x29   : > { %s1007_s28 = scalar_lea.hbm %s1378_s16, 256  ;;  %p1013_p6 = scmp.lt.u32.totalorder %s1378_s16, %s1704_s1 }
  0x2a   : > { %p1008_p2 = scmp.ne.s32.totalorder %s1378_s16, %s1007_s28  ;;  %p1014_p7 = scmp.lt.u32.totalorder %s1012_s17, %s1007_s28 }
  0x2b   : > { %p1016_p12 = scmp.lt.u32.totalorder %s1007_s28, %s1378_s16 }
  0x2c   : > { %p1010_p4 = pnand %p1391_p3, %p1008_p2  ;;  %p1015_p10 = por %p1014_p7, %p1013_p6 }
  0x2e   : > { %p1011_p5 = pneg %p1010_p4  ;;  %p1017_p0 = por %p1016_p12, %p1015_p10 }
  0x30   : > { %p1018_p1 = pnand %p1017_p0, %p1011_p5 }
  0x32   : > { %1021 = shalt.err (!%p1018_p1)
}
  0x33   : > { %s1022_s13 = scalar_lea.vmem %s1382_s25, 256  ;;  %s1251_s14 = smov [#allocation5]  }
  0x34   : > { %p1023_p2 = scmp.ne.s32.totalorder %s1382_s25, %s1022_s13  ;;  %s1027_s15 = sshll.u32 %s1251_s14, 4  ;;  %s1028_s15 = int_to_ptr.vmem [resolvable:$false] %s1027_s15 }
  0x35   : > { %s1029_s22 = scalar_lea.vmem %s1028_s15, 512  ;;  %p1030_p9 = scmp.lt.s32.totalorder %s1382_s25, %s1028_s15 }
  0x36   : > { %p1025_p4 = pnand %p1023_p2, %p1391_p3  ;;  %p1031_p8 = scmp.lt.s32.totalorder %s1029_s22, %s1022_s13 }
  0x38   : > { %p1026_p11 = pneg %p1025_p4  ;;  %p1032_p6 = por %p1031_p8, %p1030_p9 }
  0x3a   : > { %p1033_p7 = pnand %p1032_p6, %p1026_p11 }
  0x3c   : > { %1036 = shalt.err (!%p1033_p7)
}
  0x3d   : > { %s1684_s26 = smov 128   ;;  %s1686_s28 = smov 8  }
  0x3e   : > { %931 = dma.hbm_to_vmem [thread:$0]  (!%p1369_p13), %s1378_s16, 256, %s1382_s25, %s1385_s27, %s1684_s26, %s1684_s26, %s1686_s28  }
  0x3f   : > { %p1706_p8 = scmp.lt.s32.totalorder %s1249_s23, 9  ;;  %p1707_p9 = scmp.ge.s32.totalorder %s1249_s23, 1 }
  0x40   : > { %s1709_s0 = sld [smem:[#allocation24_spill]]  ;;  %s229_s22 = scalar_lea.vmem [#allocation2], %s1362_s10 }
  0x41   : > { %p1422_p11 = pnand %p1707_p9, %p1706_p8  ;;  %s238_s1 = sshll.u32 %s229_s22, 4  ;;  %s1433_s1 = int_to_ptr.vmem [resolvable:$true] %s238_s1 }
  0x42   : > { %s1439_s26 = scalar_lea.hbm %s1676_s2, %s1365_s11  ;;  %s226_s28 = scalar_lea.sflag [#allocation3], %s1359_s9 }
  0x43   : > { %s1708_s17 = scalar_select %p1422_p11, 1, 0 }
  0x46   : > { %s1430_s15 = scalar_lea.hbm %s1709_s0, %s1365_s11  ;;  %s1042_s20 = scalar_lea.hbm %s1709_s0, 2048 }
  0x47   : > { %s1037_s7 = scalar_lea.hbm %s1430_s15, 256  ;;  %p1043_p10 = scmp.lt.u32.totalorder %s1430_s15, %s1709_s0 }
  0x48   : > { %p1038_p0 = scmp.ne.s32.totalorder %s1430_s15, %s1037_s7  ;;  %p1044_p12 = scmp.lt.u32.totalorder %s1042_s20, %s1037_s7 }
  0x49   : > { %p1046_p4 = scmp.lt.u32.totalorder %s1037_s7, %s1430_s15 }
  0x4a   : > { %p1040_p1 = pnand %p1038_p0, %p1391_p3  ;;  %p1045_p2 = por %p1044_p12, %p1043_p10 }
  0x4c   : > { %p1041_p5 = pneg %p1040_p1  ;;  %p1047_p6 = por %p1046_p4, %p1045_p2 }
  0x4e   : > { %p1048_p7 = pnand %p1047_p6, %p1041_p5 }
  0x50   : > { %1051 = shalt.err (!%p1048_p7)
}
  0x51   : > { %s1052_s22 = scalar_lea.vmem %s1433_s1, 256  ;;  %s1254_s16 = smov [#allocation2]  }
  0x52   : > { %p1053_p8 = scmp.ne.s32.totalorder %s1433_s1, %s1052_s22  ;;  %s1057_s25 = sshll.u32 %s1254_s16, 4  ;;  %s1058_s25 = int_to_ptr.vmem [resolvable:$false] %s1057_s25 }
  0x53   : > { %s1059_s18 = scalar_lea.vmem %s1058_s25, 512  ;;  %p1060_p1 = scmp.lt.s32.totalorder %s1433_s1, %s1058_s25 }
  0x54   : > { %p1055_p9 = pnand %p1053_p8, %p1391_p3  ;;  %p1061_p11 = scmp.lt.s32.totalorder %s1059_s18, %s1052_s22 }
  0x56   : > { %p1056_p0 = pneg %p1055_p9  ;;  %p1062_p10 = por %p1061_p11, %p1060_p1 }
  0x58   : > { %p1063_p12 = pnand %p1062_p10, %p1056_p0 }
  0x5a   : > { %1066 = shalt.err (!%p1063_p12)
}
  0x5b   : > { %s1710_s20 = smov 8   ;;  %s1711_s7 = smov 128  }
  0x5c   : > { %928 = dma.hbm_to_vmem [thread:$0]  (!%p1369_p13), %s1430_s15, 256, %s1433_s1, %s226_s28, %s1711_s7, %s1711_s7, %s1710_s20  }
  0x5d   : > { %s273_s8 = scalar_lea.vmem [#allocation7], %s1362_s10  ;;  %s1067_s14 = scalar_lea.hbm %s1439_s26, 256 }
  0x5e   : > { %s280_s13 = sshll.u32 %s273_s8, 4  ;;  %p1068_p11 = scmp.ne.s32.totalorder %s1439_s26, %s1067_s14  ;;  %s1469_s13 = int_to_ptr.vmem [resolvable:$true] %s280_s13 }
  0x5f   : > { %s1072_s25 = scalar_lea.hbm %s1676_s2, 2048  ;;  %p1073_p4 = scmp.lt.u32.totalorder %s1439_s26, %s1676_s2 }
  0x60   : > { %p1070_p5 = pnand %p1068_p11, %p1391_p3  ;;  %p1074_p6 = scmp.lt.u32.totalorder %s1072_s25, %s1067_s14 }
  0x61   : > { %p1076_p8 = scmp.lt.u32.totalorder %s1067_s14, %s1439_s26 }
  0x62   : > { %p1071_p2 = pneg %p1070_p5  ;;  %p1075_p7 = por %p1074_p6, %p1073_p4 }
  0x64   : > { %p1077_p9 = por %p1076_p8, %p1075_p7 }
  0x66   : > { %p1078_p0 = pnand %p1077_p9, %p1071_p2 }
  0x68   : > { %1081 = shalt.err (!%p1078_p0)
}
  0x69   : > { %s1082_s1 = scalar_lea.vmem %s1469_s13, 256  ;;  %s1255_s28 = smov [#allocation7]  }
  0x6a   : > { %p1083_p1 = scmp.ne.s32.totalorder %s1469_s13, %s1082_s1  ;;  %s1087_s15 = sshll.u32 %s1255_s28, 4  ;;  %s1088_s15 = int_to_ptr.vmem [resolvable:$false] %s1087_s15 }
  0x6b   : > { %s1089_s0 = scalar_lea.vmem %s1088_s15, 512  ;;  %p1090_p11 = scmp.lt.s32.totalorder %s1469_s13, %s1088_s15 }
  0x6c   : > { %p1085_p10 = pnand %p1083_p1, %p1391_p3  ;;  %p1091_p5 = scmp.lt.s32.totalorder %s1089_s0, %s1082_s1 }
  0x6e   : > { %p1086_p12 = pneg %p1085_p10  ;;  %p1092_p4 = por %p1091_p5, %p1090_p11 }
  0x70   : > { %p1093_p6 = pnand %p1092_p4, %p1086_p12 }
  0x72   : > { %1096 = shalt.err (!%p1093_p6)
}
  0x73   : > { %934 = dma.hbm_to_vmem [thread:$0]  (!%p1369_p13), %s1439_s26, 256, %s1469_s13, %s1385_s27, %s1711_s7, %s1711_s7, %s1710_s20  }
  0x74   : > { %s1500_s22 = scalar_lea.hbm %s1677_s3, %s1365_s11  ;;  %s294_s16 = scalar_lea.vmem [#allocation8], %s1362_s10 }
  0x75   : > { %s303_s25 = sshll.u32 %s294_s16, 4  ;;  %s291_s18 = scalar_lea.sflag [#allocation9], %s1359_s9  ;;  %s1503_s25 = int_to_ptr.vmem [resolvable:$true] %s303_s25 }
  0x76   : > { %s1097_s1 = scalar_lea.hbm %s1500_s22, 256  ;;  %s1102_s13 = scalar_lea.hbm %s1677_s3, 2048 }
  0x77   : > { %p1098_p2 = scmp.ne.s32.totalorder %s1500_s22, %s1097_s1  ;;  %p1103_p9 = scmp.lt.u32.totalorder %s1500_s22, %s1677_s3 }
  0x78   : > { %p1104_p0 = scmp.lt.u32.totalorder %s1102_s13, %s1097_s1  ;;  %p1106_p10 = scmp.lt.u32.totalorder %s1097_s1, %s1500_s22 }
  0x79   : > { %p1100_p7 = pnand %p1098_p2, %p1391_p3 }
  0x7a   : > { %p1105_p1 = por %p1104_p0, %p1103_p9 }
  0x7b   : > { %p1101_p8 = pneg %p1100_p7 }
  0x7c   : > { %p1107_p12 = por %p1106_p10, %p1105_p1 }
  0x7e   : > { %p1108_p11 = pnand %p1107_p12, %p1101_p8 }
  0x80   : > { %1111 = shalt.err (!%p1108_p11)
}
  0x81   : > { %s1112_s10 = scalar_lea.vmem %s1503_s25, 256  ;;  %s1256_s15 = smov [#allocation8]  }
  0x82   : > { %p1113_p5 = scmp.ne.s32.totalorder %s1503_s25, %s1112_s10  ;;  %s1117_s0 = sshll.u32 %s1256_s15, 4  ;;  %s1118_s0 = int_to_ptr.vmem [resolvable:$false] %s1117_s0 }
  0x83   : > { %s1119_s8 = scalar_lea.vmem %s1118_s0, 512  ;;  %p1120_p2 = scmp.lt.s32.totalorder %s1503_s25, %s1118_s0 }
  0x84   : > { %p1115_p4 = pnand %p1113_p5, %p1391_p3  ;;  %p1121_p7 = scmp.lt.s32.totalorder %s1119_s8, %s1112_s10 }
  0x86   : > { %p1116_p6 = pneg %p1115_p4  ;;  %p1122_p9 = por %p1121_p7, %p1120_p2 }
  0x88   : > { %p1123_p0 = pnand %p1122_p9, %p1116_p6 }
  0x8a   : > { %1126 = shalt.err (!%p1123_p0)
}
  0x8b   : > { %937 = dma.hbm_to_vmem [thread:$0]  (!%p1369_p13), %s1500_s22, 256, %s1503_s25, %s291_s18, %s1711_s7, %s1711_s7, %s1710_s20  }
  0x8c   : > { %p1712_p3 = scmp.ne.s32.totalorder %s1708_s17, 0 }
  0x8d   : > { %s1535_s29 = sand.u32 (!%p1712_p3), 1, %s1233_s19   ;;  %p1713_p8 = scmp.ne.s32.totalorder (!%p1712_p3), %s1698_s30, 0 }
  0x8e   : > { %315 = sbr.rel (%p1712_p3) target bundleno = 926 (0x39e), region = 36  ;;  %s1538_s14 = sshll.u32 (!%p1712_p3), %s1535_s29, 4 }
  0x8f   : > { %s318_s12 = scalar_lea.sflag (!%p1712_p3), [#allocation3], %s1535_s29  ;;  %s321_s16 = scalar_lea.vmem (!%p1712_p3), [#allocation2], %s1538_s14 }
  0x95   : > { %1208 = dma.done.wait (%p1713_p8), %s318_s12, 256  }
  0x96   : > { %1210 = vsyncadd (%p1713_p8), %s318_s12, 4294967040  ;;  %s326_s9 = sand.u32 1, %s1322_s24   ;;  %s330_s20 = scalar_lea.vmem [#allocation5], %s1538_s14 }
  0x97   : > { %s327_s17 = scalar_lea.sflag [#allocation6], %s326_s9 }
  0x98   : > { %1212 = dma.done.wait (%p1713_p8), %s327_s17, 512  }
  0x99   : > { %1214 = vsyncadd (%p1713_p8), %s327_s17, 4294966784  ;;  %s339_s7 = scalar_lea.vmem [#allocation7], %s1538_s14  ;;  %s345_s22 = scalar_lea.sflag [#allocation9], %s1535_s29 }
  0x9a   : > { %s348_s25 = scalar_lea.vmem [#allocation8], %s1538_s14 }
  0x9b   : > { %1216 = dma.done.wait (%p1713_p8), %s345_s22, 256  }
  0x9c   : > { %1218 = vsyncadd (%p1713_p8), %s345_s22, 4294967040  ;;  %vm409_vm0 = vcmask 130048   ;;  %v401_v0 = vld [vmem:[%s330_s20] sm:$0xff]  ;;  %v402_v1 = vld [vmem:[%s330_s20 + $0x8] sm:$0xff]  ;;  %s394_s24 = scalar_lea.vmem [#allocation11], %s1538_s14  ;;  %s879_s30 = sshll.u32 %s1241_s21, 8 }
  0x9d   : > { %vm904_vm1 = vmpackc.low %vm409_vm0, %vm409_vm0  ;;  %v399_v2 = vld [vmem:[%s321_s16] sm:$0xff]  ;;  %v903_v3 = vpack.c.bf16 %v402_v1, %v401_v0  ;;  %v400_v5 = vld [vmem:[%s321_s16 + $0x8] sm:$0xff]  ;;  %s1582_s27 = scalar_lea.hbm %s1679_s5, %s879_s30  ;;  %s647_s26 = sshll.u32 %s394_s24, 4  ;;  %s1584_s26 = int_to_ptr.vmem [resolvable:$true] %s647_s26 }
  0x9e   : > { %v407_v4 = vmul.f32 0.25, %v399_v2  ;;  %v408_v6 = vmul.f32 0.25, %v400_v5  ;;  %v405_v7 = vld [vmem:[%s348_s25] sm:$0xff]  ;;  %v406_v8 = vld [vmem:[%s348_s25 + $0x8] sm:$0xff]  ;;  %s614_s13 = scalar_lea.sflag [#allocation12], %s1535_s29  ;;  %s1127_s11 = scalar_lea.vmem %s1584_s26, 256 }
  0x9f   : > { %905 = vmatprep.subr.msk.bf16.mxu0 %vm904_vm1, %v903_v3  ;;  %vm497_vm2 = vcmp.eq.s32.totalorder %v405_v7, 0  ;;  %vm498_vm3 = vcmp.eq.s32.totalorder %v406_v8, 0  ;;  %v403_v25 = vld [vmem:[%s339_s7] sm:$0xff]  ;;  %v404_v26 = vld [vmem:[%s339_s7 + $0x8] sm:$0xff]  ;;  %p1128_p13 = scmp.ne.s32.totalorder %s1584_s26, %s1127_s11  ;;  %p1714_p1 = scmp.ne.s32.totalorder %s1699_s6, 0 }
  0xa0   : > { %893 = vmatprep.mubr.msk.f32.mxu0 %vm409_vm0, %v407_v4  ;;  %908 = vmatpush3.bf16.xpose.msk.msra.mxu0 %vm904_vm1, %v903_v3  ;;  %v909_v27 = vpack.c.bf16 %v404_v26, %v403_v25  ;;  %s1257_s28 = smov [#allocation11]  }
  0xa1   : > { %p1129_p10 = pnand %p1128_p13, %p1714_p1  ;;  %s1131_s10 = sshll.u32 %s1257_s28, 4  ;;  %s1132_s10 = int_to_ptr.vmem [resolvable:$false] %s1131_s10 }
  0xa2   : > { %910 = vmatprep.subr.bf16.mxu1 %v909_v27  ;;  %s1133_s15 = scalar_lea.vmem %s1132_s10, 512  ;;  %p1134_p11 = scmp.lt.s32.totalorder %s1584_s26, %s1132_s10 }
  0xa3   : > { %912 = vmatpush3.bf16.msra.mxu1 %v909_v27  ;;  %p1130_p12 = pneg %p1129_p10  ;;  %p1135_p5 = scmp.lt.s32.totalorder %s1133_s15, %s1127_s11 }
  0xa5   : > { %p1136_p4 = por %p1135_p5, %p1134_p11 }
  0xa7   : > { %894 = vmatmul.mubr.msk.f32.vlgmr.msra.gmra.mrb[0].mxu0 %vm409_vm0, %v408_v6  ;;  %p1137_p6 = pnand %p1136_p4, %p1130_p12 }
 0x17a   : > { %v895_v9 = vpop.f32.mrb[0].mxu0 }
 0x17b   : > { %v488_v10 = vpop.f32.mrb[1].mxu0  ;;  %v500_v13 = vsel %vm498_vm3, -1e+09, %v895_v9 }
 0x17c   : > { %v499_v11 = vsel %vm497_vm2, -1e+09, %v488_v10  ;;  %v504_v14 = vsel %vm409_vm0, %v500_v13, -inf }
 0x17d   : > { %v501_v12 = vsel %vm409_vm0, %v499_v11, -inf }
 0x17e   : > { %502 = vmax.xlane.f32.xlu0 %v501_v12 }
 0x182   : > { %505 = vmax.xlane.f32.xlu0 %v504_v14 }
 0x20b   : > { %v503_v15 = vpop.xlane.xlu0 %502 }
 0x20c   : > { %v507_v16 = vsub.f32 %v499_v11, %v503_v15 }
 0x20e   : > { %v509_v17 = vmul.f32 1.442695, %v507_v16 }
 0x20f   : > { %v506_v18 = vpop.xlane.xlu0 %505 }
 0x210   : > { %999 = vpow2.f32 %v509_v17  ;;  %v508_v19 = vsub.f32 %v500_v13, %v506_v18 }
 0x212   : > { %v511_v20 = vmul.f32 1.442695, %v508_v19 }
 0x214   : > { %1001 = vpow2.f32 %v511_v20 }
 0x21a   : > { %v1000_v21 = vpop.eup %999 }
 0x21b   : > { %v513_v22 = vsel %vm409_vm0, %v1000_v21, 0.0 }
 0x21c   : > { %514 = vadd.xlane.f32.xlu1 %v513_v22 }
 0x21e   : > { %v1002_v23 = vpop.eup %1001 }
 0x21f   : > { %v516_v24 = vsel %vm409_vm0, %v1002_v23, 0.0 }
 0x220   : > { %517 = vadd.xlane.f32.xlu1 %v516_v24 }
 0x2a9   : > { %v515_v28 = vpop.xlane.xlu1 %514 }
 0x2aa   : > { %1003 = vrcp.f32 %v515_v28 }
 0x2ad   : > { %v518_v29 = vpop.xlane.xlu1 %517 }
 0x2ae   : > { %1005 = vrcp.f32 %v518_v29 }
 0x2b4   : > { %v1004_v30 = vpop.eup %1003 }
 0x2b5   : > { %v520_v31 = vmul.f32 %v1004_v30, %v1000_v21 }
 0x2b7   : > { %900 = vmatprep.mubr.msk.f32.mxu1 %vm409_vm0, %v520_v31  ;;  %606 = vst.msk [vmem:[%s394_s24] sm:$0xff] %vm409_vm0, %v520_v31 }
 0x2b8   : > { %v1006_v32 = vpop.eup %1005 }
 0x2b9   : > { %v522_v33 = vmul.f32 %v1006_v32, %v1002_v23 }
 0x2bb   : > { %901 = vmatmul.mubr.msk.f32.vlgmr.msra.gmra.mrb[0].mxu1 %vm409_vm0, %v522_v33  ;;  %607 = vst.msk [vmem:[%s394_s24 + $0x8] sm:$0xff] %vm409_vm0, %v522_v33 }
 0x2bc   : > { %1140 = shalt.err (!%p1137_p6)
}
 0x2bd   : > { %s1141_s0 = scalar_lea.hbm %s1582_s27, 256  ;;  %s1145_s16 = scalar_lea.hbm %s1679_s5, 2048 }
 0x2be   : > { %p1142_p2 = scmp.ne.s32.totalorder %s1582_s27, %s1141_s0  ;;  %p1146_p0 = scmp.lt.u32.totalorder %s1582_s27, %s1679_s5 }
 0x2bf   : > { %p1147_p3 = scmp.lt.u32.totalorder %s1145_s16, %s1141_s0  ;;  %p1149_p13 = scmp.lt.u32.totalorder %s1141_s0, %s1582_s27 }
 0x2c0   : > { %p1143_p7 = pnand %p1142_p2, %p1714_p1 }
 0x2c1   : > { %p1148_p8 = por %p1147_p3, %p1146_p0 }
 0x2c2   : > { %p1144_p9 = pneg %p1143_p7 }
 0x2c3   : > { %p1150_p10 = por %p1149_p13, %p1148_p8 }
 0x2c5   : > { %p1151_p12 = pnand %p1150_p10, %p1144_p9 }
 0x2c7   : > { %1154 = shalt.err (!%p1151_p12)
}
 0x2c8   : > { %s1258_s20 = smov 128   ;;  %s1259_s7 = smov 8  }
 0x2c9   : > { %922 = dma.vmem_to_hbm [thread:$0]  (%p1714_p1), %s1584_s26, 256, %s1582_s27, %s614_s13, %s1258_s20, %s1258_s20, %s1259_s7  }
 0x2ca   : > { %s387_s22 = scalar_lea.vmem [#allocation10], %s1538_s14  ;;  %s1621_s1 = scalar_lea.hbm %s1678_s4, %s879_s30 }
 0x2cb   : > { %s629_s25 = sshll.u32 %s387_s22, 4  ;;  %s609_s27 = scalar_lea.sflag [#allocation4], %s1535_s29  ;;  %s1614_s25 = int_to_ptr.vmem [resolvable:$true] %s629_s25 }
 0x2cc   : > { %s1155_s14 = scalar_lea.vmem %s1614_s25, 256  ;;  %s1260_s26 = smov [#allocation10]  }
 0x2cd   : > { %p1156_p11 = scmp.ne.s32.totalorder %s1614_s25, %s1155_s14  ;;  %s1159_s13 = sshll.u32 %s1260_s26, 4  ;;  %s1160_s13 = int_to_ptr.vmem [resolvable:$false] %s1159_s13 }
 0x2ce   : > { %s1161_s21 = scalar_lea.vmem %s1160_s13, 512  ;;  %p1162_p6 = scmp.lt.s32.totalorder %s1614_s25, %s1160_s13 }
 0x2cf   : > { %p1157_p5 = pnand %p1156_p11, %p1714_p1  ;;  %p1163_p2 = scmp.lt.s32.totalorder %s1161_s21, %s1155_s14 }
 0x2d1   : > { %p1158_p4 = pneg %p1157_p5  ;;  %p1164_p7 = por %p1163_p2, %p1162_p6 }
 0x2d3   : > { %p1165_p9 = pnand %p1164_p7, %p1158_p4 }
 0x38e   : > { %v902_v34 = vpop.f32.mrb[0].mxu1 }
 0x38f   : > { %605 = vst.msk [vmem:[%s387_s22 + $0x8] sm:$0xff] %vm409_vm0, %v902_v34  ;;  %v595_v35 = vpop.f32.mrb[1].mxu1 }
 0x390   : > { %604 = vst.msk [vmem:[%s387_s22] sm:$0xff] %vm409_vm0, %v595_v35 }
 0x391   : > { %1168 = shalt.err (!%p1165_p9)
}
 0x392   : > { %s1169_s30 = scalar_lea.hbm %s1621_s1, 256  ;;  %s1173_s10 = scalar_lea.hbm %s1678_s4, 2048 }
 0x393   : > { %p1170_p0 = scmp.ne.s32.totalorder %s1621_s1, %s1169_s30  ;;  %p1174_p13 = scmp.lt.u32.totalorder %s1621_s1, %s1678_s4 }
 0x394   : > { %p1175_p10 = scmp.lt.u32.totalorder %s1173_s10, %s1169_s30  ;;  %p1177_p11 = scmp.lt.u32.totalorder %s1169_s30, %s1621_s1 }
 0x395   : > { %p1171_p3 = pnand %p1170_p0, %p1714_p1 }
 0x396   : > { %p1176_p12 = por %p1175_p10, %p1174_p13 }
 0x397   : > { %p1172_p8 = pneg %p1171_p3 }
 0x398   : > { %p1178_p5 = por %p1177_p11, %p1176_p12 }
 0x39a   : > { %p1179_p4 = pnand %p1178_p5, %p1172_p8 }
 0x39c   : > { %1182 = shalt.err (!%p1179_p4)
}
 0x39d   : > { %921 = dma.vmem_to_hbm [thread:$0]  (%p1714_p1), %s1614_s25, 256, %s1621_s1, %s609_s27, %s1258_s20, %s1258_s20, %s1259_s7  }
 0x39e PF: > { %s1715_s8 = sld [smem:[#allocation18_spill]]  ;;  %s1716_s12 = sld [smem:[#allocation23_spill]] }
 0x39f   : > { %p946_p6 = scmp.ge.s32.totalorder %s1249_s23, 2 }
 0x3a4   : > { %s662_s16 = sand.u32 1, %s1715_s8   ;;  %p1717_p2 = scmp.ne.s32.totalorder %s1716_s12, 0 }
 0x3a5   : > { %s663_s9 = scalar_lea.sflag [#allocation4], %s662_s16 }
 0x3a6   : > { %p939_p7 = pnand %p946_p6, %p1717_p2 }
 0x3a8   : > { %1220 = dma.done.wait (!%p939_p7), %s663_s9, 256  }
 0x3a9   : > { %1222 = vsyncadd (!%p939_p7), %s663_s9, 4294967040  ;;  %s672_s6 = scalar_lea.sflag [#allocation12], %s662_s16 }
 0x3aa   : > { %1224 = dma.done.wait (!%p939_p7), %s672_s6, 256  }
 0x3ab   : > { %1226 = vsyncadd (!%p939_p7), %s672_s6, 4294967040  ;;  %s31_s23 = sadd.s32 1, %s1249_s23   ;;  %s1718_s29 = sld [smem:[#allocation19_spill]] }
 0x3ac   : > { %p28_p9 = scmp.ge.s32.totalorder %s31_s23, 10   ;;  %s1719_s20 = sld [smem:[#allocation22_spill]] }
 0x3ad   : > { %s1720_s21 = sld [smem:[#allocation20_spill]]  ;;  %s1721_s22 = sld [smem:[#allocation21_spill]] }
 0x3ae   : > { %s1722_s18 = smov %s1233_s19  ;;  %30 = sbr.rel (!%p28_p9) target bundleno = 15 (0xf), region = 135 }
 0x3b1   : > { %s1723_s19 = smov %s1718_s29 }
 0x3b5   :  { %677 = vsyncpa [#allocation3], 1 }
 0x3b6   :  { %679 = vsyncpa [#allocation3 + $0x1], 1 }
 0x3b7   :  { %680 = vsyncpa [#allocation6], 1 }
 0x3b8   :  { %682 = vsyncpa [#allocation6 + $0x1], 1 }
 0x3b9   :  { %683 = vsyncpa [#allocation9], 1 }
 0x3ba   :  { %685 = vsyncpa [#allocation9 + $0x1], 1 }
 0x3bb   :  { %686 = vsyncpa [#allocation4], 1 }
 0x3bc   :  { %688 = vsyncpa [#allocation4 + $0x1], 1 }
 0x3bd   :  { %689 = vsyncpa [#allocation12], 1 }
 0x3be   :  { %691 = vsyncpa [#allocation12 + $0x1], 1 }

</bundles_post_ra>
